<compile_context>
chip_gen: v6e
topology: v6e:2x2x1
jax: 0.10.0
libtpu: 0.0.40
codegen_flags: <defaults>
</compile_context>

<pallas_src>
import jax
import jax.numpy as jnp
from jax.experimental import pallas as pl
from jax.experimental.pallas import tpu as pltpu


def _residual_conv1x1_kernel(scale_ref, w_ref, b_ref, x_ref, o_ref):
    """One (image, spatial-tile) block:
        o[co, :] = x[co, :] + scale * (sum_ci w[co, ci] * x[ci, :] + b[co])

    scale_ref : SMEM (1,)     f32   residual scaling factor
    w_ref     : SMEM (C, C)   f32   conv1x1 weight, PyTorch (C_out, C_in) layout
    b_ref     : SMEM (C,)     f32   bias
    x_ref     : VMEM (C, TS)        input  (channels on sublanes, spatial on lanes)
    o_ref     : VMEM (C, TS)        output
    """
    C = x_ref.shape[0]
    scale = scale_ref[0]

    # Load every input-channel row once: plain lane-dense (1, TS) vector loads.
    xrows = [x_ref[ci:ci + 1, :].astype(jnp.float32) for ci in range(C)]

    # TODO(synk): for large C (>= ~64) switch to a channels-on-lanes MXU matmul
    # path with Cout/Cin tiling; the unrolled VPU mix below targets small C.
    for co in range(C):
        acc = xrows[0] * w_ref[co, 0]
        for ci in range(1, C):
            acc = acc + xrows[ci] * w_ref[co, ci]
        y = xrows[co] + scale * (acc + b_ref[co])
        o_ref[co:co + 1, :] = y.astype(o_ref.dtype)


def _pick_spatial_tile(hw, max_tile):
    """Largest lane-dense spatial tile: full axis if it fits, else a multiple of
    128 that divides hw; falls back to the full axis (always legal)."""
    if hw <= max_tile:
        return hw
    if hw % 128 == 0:
        t = (max_tile // 128) * 128
        while t >= 128:
            if hw % t == 0:
                return t
            t -= 128
    return hw


def residual_wrapper_forward(x_nchw, weight, bias, scale, *, max_spatial_tile=32768):
    """Fused ResidualWrapper(Conv2d(C, C, 1)) forward, operating natively on NCHW.

    x_nchw : (N, C, H, W)
    weight : (C_out, C_in)   (1x1 conv kernel, spatial dims squeezed)
    bias   : (C,)
    scale  : ()
    """
    N, C, H, W = x_nchw.shape
    HW = H * W

    # Free reshape (contiguous dim merge) -- no HBM transpose round-trips.
    x3 = x_nchw.reshape(N, C, HW)

    # Size the spatial tile against a conservative VMEM budget (fits v7x's
    # smaller 64 MiB physical / 32 MiB scoped VMEM too):
    # double-buffered input + output tiles ~= 4 * C * tile_s * itemsize bytes.
    itemsize = jnp.dtype(x_nchw.dtype).itemsize
    vmem_budget = 16 * 1024 * 1024
    cap = max(128, (vmem_budget // (4 * C * itemsize)) // 128 * 128)
    tile_s = _pick_spatial_tile(HW, min(max_spatial_tile, cap))

    grid = (N, HW // tile_s)

    scale1 = jnp.asarray(scale, jnp.float32).reshape(1)
    w2 = jnp.asarray(weight, jnp.float32)          # (C_out, C_in) -- scalar reads
    b1 = jnp.asarray(bias, jnp.float32)

    out3 = pl.pallas_call(
        _residual_conv1x1_kernel,
        out_shape=jax.ShapeDtypeStruct((N, C, HW), x_nchw.dtype),
        grid=grid,
        in_specs=[
            pl.BlockSpec(memory_space=pltpu.MemorySpace.SMEM),           # scale (1,)
            pl.BlockSpec(memory_space=pltpu.MemorySpace.SMEM),           # weight (C, C)
            pl.BlockSpec(memory_space=pltpu.MemorySpace.SMEM),           # bias (C,)
            pl.BlockSpec((None, C, tile_s), lambda n, s: (n, 0, s)),     # x block (C, TS)
        ],
        out_specs=pl.BlockSpec((None, C, tile_s), lambda n, s: (n, 0, s)),
        compiler_params=pltpu.CompilerParams(
            dimension_semantics=("parallel", "parallel")),               # megacore-friendly
    )(scale1, w2, b1, x3)

    return out3.reshape(N, C, H, W)


if __name__ == "__main__":
    key = jax.random.PRNGKey(0)
    kx, kw, kb = jax.random.split(key, 3)

    N, C, H, W = 2, 4, 16, 16
    x = jax.random.normal(kx, (N, C, H, W), dtype=jnp.float32)

    # Deterministic "module" parameters: Conv2d(C, C, kernel_size=1)
    weight = jax.random.normal(kw, (C, C), dtype=jnp.float32) * 0.1   # (Cout, Cin)
    bias = jax.random.normal(kb, (C,), dtype=jnp.float32) * 0.1
    scale = jnp.float32(0.5)   # ResidualWrapper scale parameter (requires_grad=False)

    out = jax.block_until_ready(residual_wrapper_forward(x, weight, bias, scale))

    # Pure-JAX reference: x + scale * (conv1x1(x) + bias)
    y_ref = jnp.einsum("nchw,oc->nohw", x, weight) + bias[None, :, None, None]
    ref = x + scale * y_ref
    assert out.shape == x.shape and out.dtype == x.dtype
    assert jnp.allclose(out, ref, atol=1e-5, rtol=1e-5)

    print("KERNEL_OK")
</pallas_src>

<mosaic_0001>
module attributes {stable_mosaic.version = 11 : i64} {
  func.func @_residual_conv1x1_kernel(%arg0: i32, %arg1: i32, %arg2: memref<1xf32, #tpu.memory_space<smem>>, %arg3: memref<4x4xf32, #tpu.memory_space<smem>>, %arg4: memref<4xf32, #tpu.memory_space<smem>>, %arg5: memref<1x4x256xf32, #tpu.memory_space<vmem>>, %arg6: memref<1x4x256xf32, #tpu.memory_space<vmem>>) attributes {dimension_semantics = [#tpu.dimension_semantics<parallel>, #tpu.dimension_semantics<parallel>], iteration_bounds = array<i64: 2, 1>, scalar_prefetch = 0 : i64, scratch_operands = 0 : i64, tpu.core_type = #tpu.core_type<tc>, window_params = [{transform_indices = @transform_0, window_bounds = array<i64: 1>}, {transform_indices = @transform_1, window_bounds = array<i64: 4, 4>}, {transform_indices = @transform_2, window_bounds = array<i64: 4>}, {transform_indices = @transform_3, window_bounds = array<i64: 1, 4, 256>}, {transform_indices = @transform_4, window_bounds = array<i64: 1, 4, 256>}]} {
    %c0 = arith.constant 0 : index
    %0 = memref.load %arg2[%c0] : memref<1xf32, #tpu.memory_space<smem>>
    %c0_0 = arith.constant 0 : index
    %c0_1 = arith.constant 0 : index
    %c0_2 = arith.constant 0 : index
    %1 = vector.load %arg5[%c0_0, %c0_1, %c0_2] : memref<1x4x256xf32, #tpu.memory_space<vmem>>, vector<1x1x256xf32>
    %2 = vector.shape_cast %1 : vector<1x1x256xf32> to vector<1x256xf32>
    %c0_3 = arith.constant 0 : index
    %c1 = arith.constant 1 : index
    %c0_4 = arith.constant 0 : index
    %3 = vector.load %arg5[%c0_3, %c1, %c0_4] : memref<1x4x256xf32, #tpu.memory_space<vmem>>, vector<1x1x256xf32>
    %4 = vector.shape_cast %3 : vector<1x1x256xf32> to vector<1x256xf32>
    %c0_5 = arith.constant 0 : index
    %c2 = arith.constant 2 : index
    %c0_6 = arith.constant 0 : index
    %5 = vector.load %arg5[%c0_5, %c2, %c0_6] : memref<1x4x256xf32, #tpu.memory_space<vmem>>, vector<1x1x256xf32>
    %6 = vector.shape_cast %5 : vector<1x1x256xf32> to vector<1x256xf32>
    %c0_7 = arith.constant 0 : index
    %c3 = arith.constant 3 : index
    %c0_8 = arith.constant 0 : index
    %7 = vector.load %arg5[%c0_7, %c3, %c0_8] : memref<1x4x256xf32, #tpu.memory_space<vmem>>, vector<1x1x256xf32>
    %8 = vector.shape_cast %7 : vector<1x1x256xf32> to vector<1x256xf32>
    %c0_9 = arith.constant 0 : index
    %c0_10 = arith.constant 0 : index
    %9 = memref.load %arg3[%c0_9, %c0_10] : memref<4x4xf32, #tpu.memory_space<smem>>
    %10 = vector.broadcast %9 : f32 to vector<1x256xf32>
    %11 = arith.mulf %2, %10 : vector<1x256xf32>
    %c0_11 = arith.constant 0 : index
    %c1_12 = arith.constant 1 : index
    %12 = memref.load %arg3[%c0_11, %c1_12] : memref<4x4xf32, #tpu.memory_space<smem>>
    %13 = vector.broadcast %12 : f32 to vector<1x256xf32>
    %14 = arith.mulf %4, %13 : vector<1x256xf32>
    %15 = arith.addf %11, %14 : vector<1x256xf32>
    %c0_13 = arith.constant 0 : index
    %c2_14 = arith.constant 2 : index
    %16 = memref.load %arg3[%c0_13, %c2_14] : memref<4x4xf32, #tpu.memory_space<smem>>
    %17 = vector.broadcast %16 : f32 to vector<1x256xf32>
    %18 = arith.mulf %6, %17 : vector<1x256xf32>
    %19 = arith.addf %15, %18 : vector<1x256xf32>
    %c0_15 = arith.constant 0 : index
    %c3_16 = arith.constant 3 : index
    %20 = memref.load %arg3[%c0_15, %c3_16] : memref<4x4xf32, #tpu.memory_space<smem>>
    %21 = vector.broadcast %20 : f32 to vector<1x256xf32>
    %22 = arith.mulf %8, %21 : vector<1x256xf32>
    %23 = arith.addf %19, %22 : vector<1x256xf32>
    %c0_17 = arith.constant 0 : index
    %24 = memref.load %arg4[%c0_17] : memref<4xf32, #tpu.memory_space<smem>>
    %25 = vector.broadcast %24 : f32 to vector<1x256xf32>
    %26 = arith.addf %23, %25 : vector<1x256xf32>
    %27 = vector.broadcast %0 : f32 to vector<1x256xf32>
    %28 = arith.mulf %27, %26 : vector<1x256xf32>
    %29 = arith.addf %2, %28 : vector<1x256xf32>
    %c0_18 = arith.constant 0 : index
    %c0_19 = arith.constant 0 : index
    %c0_20 = arith.constant 0 : index
    %30 = vector.load %arg6[%c0_18, %c0_19, %c0_20] : memref<1x4x256xf32, #tpu.memory_space<vmem>>, vector<1x1x256xf32>
    %31 = vector.shape_cast %30 : vector<1x1x256xf32> to vector<1x256xf32>
    %32 = vector.shape_cast %29 : vector<1x256xf32> to vector<1x1x256xf32>
    tpu.vector_store %arg6[%c0_18, %c0_19, %c0_20], %32 {strides = array<i32>} : memref<1x4x256xf32, #tpu.memory_space<vmem>>, vector<1x1x256xf32>,
    %c1_21 = arith.constant 1 : index
    %c0_22 = arith.constant 0 : index
    %33 = memref.load %arg3[%c1_21, %c0_22] : memref<4x4xf32, #tpu.memory_space<smem>>
    %34 = vector.broadcast %33 : f32 to vector<1x256xf32>
    %35 = arith.mulf %2, %34 : vector<1x256xf32>
    %c1_23 = arith.constant 1 : index
    %c1_24 = arith.constant 1 : index
    %36 = memref.load %arg3[%c1_23, %c1_24] : memref<4x4xf32, #tpu.memory_space<smem>>
    %37 = vector.broadcast %36 : f32 to vector<1x256xf32>
    %38 = arith.mulf %4, %37 : vector<1x256xf32>
    %39 = arith.addf %35, %38 : vector<1x256xf32>
    %c1_25 = arith.constant 1 : index
    %c2_26 = arith.constant 2 : index
    %40 = memref.load %arg3[%c1_25, %c2_26] : memref<4x4xf32, #tpu.memory_space<smem>>
    %41 = vector.broadcast %40 : f32 to vector<1x256xf32>
    %42 = arith.mulf %6, %41 : vector<1x256xf32>
    %43 = arith.addf %39, %42 : vector<1x256xf32>
    %c1_27 = arith.constant 1 : index
    %c3_28 = arith.constant 3 : index
    %44 = memref.load %arg3[%c1_27, %c3_28] : memref<4x4xf32, #tpu.memory_space<smem>>
    %45 = vector.broadcast %44 : f32 to vector<1x256xf32>
    %46 = arith.mulf %8, %45 : vector<1x256xf32>
    %47 = arith.addf %43, %46 : vector<1x256xf32>
    %c1_29 = arith.constant 1 : index
    %48 = memref.load %arg4[%c1_29] : memref<4xf32, #tpu.memory_space<smem>>
    %49 = vector.broadcast %48 : f32 to vector<1x256xf32>
    %50 = arith.addf %47, %49 : vector<1x256xf32>
    %51 = vector.broadcast %0 : f32 to vector<1x256xf32>
    %52 = arith.mulf %51, %50 : vector<1x256xf32>
    %53 = arith.addf %4, %52 : vector<1x256xf32>
    %c0_30 = arith.constant 0 : index
    %c1_31 = arith.constant 1 : index
    %c0_32 = arith.constant 0 : index
    %54 = vector.load %arg6[%c0_30, %c1_31, %c0_32] : memref<1x4x256xf32, #tpu.memory_space<vmem>>, vector<1x1x256xf32>
    %55 = vector.shape_cast %54 : vector<1x1x256xf32> to vector<1x256xf32>
    %56 = vector.shape_cast %53 : vector<1x256xf32> to vector<1x1x256xf32>
    tpu.vector_store %arg6[%c0_30, %c1_31, %c0_32], %56 {strides = array<i32>} : memref<1x4x256xf32, #tpu.memory_space<vmem>>, vector<1x1x256xf32>,
    %c2_33 = arith.constant 2 : index
    %c0_34 = arith.constant 0 : index
    %57 = memref.load %arg3[%c2_33, %c0_34] : memref<4x4xf32, #tpu.memory_space<smem>>
    %58 = vector.broadcast %57 : f32 to vector<1x256xf32>
    %59 = arith.mulf %2, %58 : vector<1x256xf32>
    %c2_35 = arith.constant 2 : index
    %c1_36 = arith.constant 1 : index
    %60 = memref.load %arg3[%c2_35, %c1_36] : memref<4x4xf32, #tpu.memory_space<smem>>
    %61 = vector.broadcast %60 : f32 to vector<1x256xf32>
    %62 = arith.mulf %4, %61 : vector<1x256xf32>
    %63 = arith.addf %59, %62 : vector<1x256xf32>
    %c2_37 = arith.constant 2 : index
    %c2_38 = arith.constant 2 : index
    %64 = memref.load %arg3[%c2_37, %c2_38] : memref<4x4xf32, #tpu.memory_space<smem>>
    %65 = vector.broadcast %64 : f32 to vector<1x256xf32>
    %66 = arith.mulf %6, %65 : vector<1x256xf32>
    %67 = arith.addf %63, %66 : vector<1x256xf32>
    %c2_39 = arith.constant 2 : index
    %c3_40 = arith.constant 3 : index
    %68 = memref.load %arg3[%c2_39, %c3_40] : memref<4x4xf32, #tpu.memory_space<smem>>
    %69 = vector.broadcast %68 : f32 to vector<1x256xf32>
    %70 = arith.mulf %8, %69 : vector<1x256xf32>
    %71 = arith.addf %67, %70 : vector<1x256xf32>
    %c2_41 = arith.constant 2 : index
    %72 = memref.load %arg4[%c2_41] : memref<4xf32, #tpu.memory_space<smem>>
    %73 = vector.broadcast %72 : f32 to vector<1x256xf32>
    %74 = arith.addf %71, %73 : vector<1x256xf32>
    %75 = vector.broadcast %0 : f32 to vector<1x256xf32>
    %76 = arith.mulf %75, %74 : vector<1x256xf32>
    %77 = arith.addf %6, %76 : vector<1x256xf32>
    %c0_42 = arith.constant 0 : index
    %c2_43 = arith.constant 2 : index
    %c0_44 = arith.constant 0 : index
    %78 = vector.load %arg6[%c0_42, %c2_43, %c0_44] : memref<1x4x256xf32, #tpu.memory_space<vmem>>, vector<1x1x256xf32>
    %79 = vector.shape_cast %78 : vector<1x1x256xf32> to vector<1x256xf32>
    %80 = vector.shape_cast %77 : vector<1x256xf32> to vector<1x1x256xf32>
    tpu.vector_store %arg6[%c0_42, %c2_43, %c0_44], %80 {strides = array<i32>} : memref<1x4x256xf32, #tpu.memory_space<vmem>>, vector<1x1x256xf32>,
    %c3_45 = arith.constant 3 : index
    %c0_46 = arith.constant 0 : index
    %81 = memref.load %arg3[%c3_45, %c0_46] : memref<4x4xf32, #tpu.memory_space<smem>>
    %82 = vector.broadcast %81 : f32 to vector<1x256xf32>
    %83 = arith.mulf %2, %82 : vector<1x256xf32>
    %c3_47 = arith.constant 3 : index
    %c1_48 = arith.constant 1 : index
    %84 = memref.load %arg3[%c3_47, %c1_48] : memref<4x4xf32, #tpu.memory_space<smem>>
    %85 = vector.broadcast %84 : f32 to vector<1x256xf32>
    %86 = arith.mulf %4, %85 : vector<1x256xf32>
    %87 = arith.addf %83, %86 : vector<1x256xf32>
    %c3_49 = arith.constant 3 : index
    %c2_50 = arith.constant 2 : index
    %88 = memref.load %arg3[%c3_49, %c2_50] : memref<4x4xf32, #tpu.memory_space<smem>>
    %89 = vector.broadcast %88 : f32 to vector<1x256xf32>
    %90 = arith.mulf %6, %89 : vector<1x256xf32>
    %91 = arith.addf %87, %90 : vector<1x256xf32>
    %c3_51 = arith.constant 3 : index
    %c3_52 = arith.constant 3 : index
    %92 = memref.load %arg3[%c3_51, %c3_52] : memref<4x4xf32, #tpu.memory_space<smem>>
    %93 = vector.broadcast %92 : f32 to vector<1x256xf32>
    %94 = arith.mulf %8, %93 : vector<1x256xf32>
    %95 = arith.addf %91, %94 : vector<1x256xf32>
    %c3_53 = arith.constant 3 : index
    %96 = memref.load %arg4[%c3_53] : memref<4xf32, #tpu.memory_space<smem>>
    %97 = vector.broadcast %96 : f32 to vector<1x256xf32>
    %98 = arith.addf %95, %97 : vector<1x256xf32>
    %99 = vector.broadcast %0 : f32 to vector<1x256xf32>
    %100 = arith.mulf %99, %98 : vector<1x256xf32>
    %101 = arith.addf %8, %100 : vector<1x256xf32>
    %c0_54 = arith.constant 0 : index
    %c3_55 = arith.constant 3 : index
    %c0_56 = arith.constant 0 : index
    %102 = vector.load %arg6[%c0_54, %c3_55, %c0_56] : memref<1x4x256xf32, #tpu.memory_space<vmem>>, vector<1x1x256xf32>
    %103 = vector.shape_cast %102 : vector<1x1x256xf32> to vector<1x256xf32>
    %104 = vector.shape_cast %101 : vector<1x256xf32> to vector<1x1x256xf32>
    tpu.vector_store %arg6[%c0_54, %c3_55, %c0_56], %104 {strides = array<i32>} : memref<1x4x256xf32, #tpu.memory_space<vmem>>, vector<1x1x256xf32>,
    return
  }
  func.func @transform_0(%arg0: i32, %arg1: i32) -> i32 {
    %c0_i32 = arith.constant 0 : i32
    %c0_i32_0 = arith.constant 0 : i32
    return %c0_i32 : i32
  }
  func.func @transform_1(%arg0: i32, %arg1: i32) -> (i32, i32) {
    %c0_i32 = arith.constant 0 : i32
    %c0_i32_0 = arith.constant 0 : i32
    %c0_i32_1 = arith.constant 0 : i32
    return %c0_i32, %c0_i32_0 : i32, i32
  }
  func.func @transform_2(%arg0: i32, %arg1: i32) -> i32 {
    %c0_i32 = arith.constant 0 : i32
    %c0_i32_0 = arith.constant 0 : i32
    return %c0_i32 : i32
  }
  func.func @transform_3(%arg0: i32, %arg1: i32) -> (i32, i32, i32) {
    %c0_i32 = arith.constant 0 : i32
    %c0_i32_0 = arith.constant 0 : i32
    return %arg0, %c0_i32, %arg1 : i32, i32, i32
  }
  func.func @transform_4(%arg0: i32, %arg1: i32) -> (i32, i32, i32) {
    %c0_i32 = arith.constant 0 : i32
    %c0_i32_0 = arith.constant 0 : i32
    return %arg0, %c0_i32, %arg1 : i32, i32, i32
  }
}

</mosaic_0001>

<bundles_post_ra>
// kernel: tpu_custom_call.1
= control target key start
LH: loop header
LB: loop body
LE: loop exit
PB: predicated region body
PF: predicated region fallthrough
CT: control target
= control target key end

     0   :  { %s1028_s0 = inlined_call_operand.<no memory space> [shape: f32[1], index: 0, kind: input, shape index: {}]   ;;  %s1029_s1 = inlined_call_operand.hbm [shape: f32[4,4], index: 1, kind: input, shape index: {}]   ;;  %s1030_s2 = inlined_call_operand.vmem [shape: f32[4], index: 2, kind: input, shape index: {}]   ;;  %s1031_s3 = inlined_call_operand.hbm [shape: f32[2,4,256], index: 3, kind: input, shape index: {}]   ;;  %s1032_s4 = inlined_call_operand.hbm [shape: f32[2,4,256], index: 4, kind: output, shape index: {}]  }
   0x1   :  { %9 = sst [smem:[#allocation2]] %s1028_s0 }
   0x2   :  { %10 = vsyncpa [#allocation6], 0 }
   0x3   :  { %11 = vsyncpa [#allocation7], 0 }
   0x4   :  { %12 = vsyncpa [#allocation4], 0 }
   0x5   :  { %14 = vsyncpa [#allocation4 + $0x1], 0 }
   0x6   :  { %15 = vsyncpa [#allocation5], 0 }
   0x7   :  { %17 = vsyncpa [#allocation5 + $0x1], 0  ;;  %s789_s17 = smov 0   ;;  %s791_s18 = smov 0  }
   0x8   :  { %s793_s19 = smov 0   ;;  %s795_s20 = smov 0  }
   0x9   :  { %s797_s21 = smov 0   ;;  %s799_s22 = smov 0  }
   0xa LB: > { %s485_s0 = sadd.s32 4294967295, %s755_s22   ;;  %s486_s23 = sadd.s32 4294967294, %s755_s22   ;;  %s755_s22 = sphi %s799_s22, %s23_s22   ;;  %s751_s21 = sphi %s797_s21, %s1050_s21   ;;  %s747_s20 = sphi %s795_s20, %s1049_s20   ;;  %s743_s19 = sphi %s793_s19, %s1048_s19   ;;  %s739_s18 = sphi %s791_s18, %s1047_s18   ;;  %s735_s17 = sphi %s789_s17, %s1046_s17  }
   0xb   : > { %p120_p0 = scmp.ne.s32.totalorder %s739_s18, %s735_s17  ;;  %p823_p1 = scmp.eq.s32.totalorder %s485_s0, 0 }
   0xc   : > { %p827_p2 = scmp.eq.s32.totalorder %s485_s0, 1  ;;  %p152_p3 = scmp.eq.s32.totalorder %s486_s23, 1 }
   0xd   : > { %p833_p4 = por %p823_p1, %p120_p0  ;;  %p487_p5 = scmp.ge.s32.totalorder %s755_s22, 1 }
   0xe   : > { %p838_p6 = por %p152_p3, %p120_p0  ;;  %p159_p7 = scmp.lt.s32.totalorder %s755_s22, 3 }
   0xf   : > { %s184_s5 = sshll.u32 %s1030_s2, 4  ;;  %s35_s7 = sadd.s32 1, %s751_s21  ;;  %s185_s5 = int_to_ptr.vmem [resolvable:$true] %s184_s5 }
  0x10   : > { %s1036_s27 = scalar_select %p838_p6, 1, 0 }
  0x11   : > { %p843_p8 = pnand %p487_p5, %p159_p7  ;;  %p860_p12 = scmp.ge.s32.totalorder %s35_s7, 2 }
  0x12   : > { %s757_s9 = smov [#allocation3]   ;;  %s624_s12 = scalar_lea.vmem %s185_s5, 16 }
  0x13   : > { %p542_p10 = pneg %p843_p8  ;;  %p625_p13 = scmp.ne.s32.totalorder %s185_s5, %s624_s12 }
  0x14   : > { %p632_p7 = scmp.lt.s32.totalorder %s185_s5, %s185_s5 }
  0x15   : > { %p855_p11 = pnand %p542_p10, %p823_p1  ;;  %p633_p10 = scmp.lt.s32.totalorder %s624_s12, %s624_s12 }
  0x17   : > { %545 = dma.hbm_to_smem (!%p855_p11), %s1029_s1, 64, %s757_s9, [#allocation6]  }
  0x18   : > { %p626_p0 = pneg %p855_p11  ;;  %p634_p9 = por %p633_p10, %p632_p7 }
  0x1a   : > { %p627_p3 = pnand %p626_p0, %p625_p13 }
  0x1c   : > { %p628_p5 = pneg %p627_p3 }
  0x1e   : > { %p635_p6 = pnand %p634_p9, %p628_p5 }
  0x20   : > { %638 = shalt.err (!%p635_p6)
}
  0x21   : > { %s758_s13 = smov [#allocation8]   ;;  %s1052_s7 = smov (%p860_p12, %s35_s7), 0 }
  0x22   : > { %548 = dma.vmem_to_smem (!%p855_p11), %s185_s5, 16, %s758_s13, [#allocation7]  }
  0x23   : > { %s107_s14 = sadd.s32 1, %s743_s19  ;;  %p114_p6 = scmp.ne.s32.totalorder %s743_s19, %s739_s18 }
  0x24   : > { %s102_s15 = ssub.s32 %s751_s21, %s1052_s7  ;;  %p115_p9 = scmp.eq.s32.totalorder %s755_s22, 0 }
  0x25   : > { %p105_p13 = scmp.eq.s32.totalorder %s102_s15, 0  ;;  %p885_p0 = por %p827_p2, %p114_p6 }
  0x26   : > { %p116_p3 = por %p115_p9, %p114_p6  ;;  %p559_p5 = scmp.lt.s32.totalorder %s755_s22, 2 }
  0x27   : > { %s891_s0 = scalar_select %p105_p13, %s743_s19, %s107_s14  }
  0x28   : > { %s195_s23 = sand.u32 1, %s743_s19   ;;  %s528_s29 = sshll.u32 %s751_s21, 7 }
  0x29   : > { %s491_s30 = sshll.u32 %s195_s23, 3  ;;  %s207_s8 = scalar_lea.hbm %s1031_s3, %s528_s29 }
  0x2a   : > { %s199_s9 = scalar_lea.vmem [#allocation9], %s491_s30  ;;  %p898_p11 = pnand %p559_p5, %p116_p3 }
  0x2b   : > { %s209_s10 = sshll.u32 %s199_s9, 4  ;;  %s196_s25 = scalar_lea.sflag [#allocation4], %s195_s23  ;;  %s210_s10 = int_to_ptr.vmem [resolvable:$true] %s209_s10 }
  0x2c   : > { %p641_p2 = pneg %p898_p11  ;;  %s652_s12 = scalar_lea.vmem %s210_s10, 128 }
  0x2d   : > { %p653_p12 = scmp.ne.s32.totalorder %s210_s10, %s652_s12  ;;  %s759_s13 = smov [#allocation9]  }
  0x2e   : > { %s657_s14 = sshll.u32 %s759_s13, 4  ;;  %s658_s14 = int_to_ptr.vmem [resolvable:$false] %s657_s14 }
  0x2f   : > { %p655_p7 = pnand %p653_p12, %p641_p2  ;;  %s659_s15 = scalar_lea.vmem %s658_s14, 256 }
  0x30   : > { %p660_p6 = scmp.lt.s32.totalorder %s210_s10, %s658_s14  ;;  %p661_p9 = scmp.lt.s32.totalorder %s659_s15, %s652_s12 }
  0x31   : > { %p656_p10 = pneg %p655_p7 }
  0x32   : > { %p662_p13 = por %p661_p9, %p660_p6 }
  0x34   : > { %p663_p3 = pnand %p662_p13, %p656_p10 }
  0x36   : > { %666 = shalt.err (!%p663_p3)
}
  0x37   : > { %552 = dma.hbm_to_vmem [thread:$0]  (!%p898_p11), %s207_s8, 128, %s210_s10, %s196_s25  }
  0x38   : > { %218 = sbr.rel (%p843_p8) target bundleno = 121 (0x79), region = 36 }
  0x3d   : > { %718 = dma.done.wait (%p823_p1), [#allocation6], 64  }
  0x3e   : > { %720 = vsyncadd (%p823_p1), [#allocation6], 4294967232 }
  0x3f   : > { %722 = dma.done.wait (%p823_p1), [#allocation7], 16  }
  0x40   : > { %724 = vsyncadd (%p823_p1), [#allocation7], 4294967280  ;;  %s917_s23 = sand.u32 1, %s739_s18  }
  0x41   : > { %s497_s28 = sshll.u32 %s917_s23, 3  ;;  %s229_s29 = scalar_lea.sflag [#allocation4], %s917_s23 }
  0x42   : > { %s232_s30 = scalar_lea.vmem [#allocation9], %s497_s28 }
  0x43   : > { %726 = dma.done.wait (%p833_p4), %s229_s29, 128  }
  0x44   : > { %728 = vsyncadd (%p833_p4), %s229_s29, 4294967168 }
  0x45   : > { %237 = sfence }
  0x46   : > { %s927_s5 = sld [smem:[#allocation2]]  ;;  %v929_v0 = vld [vmem:[%s232_s30] ss:$4 sm:$0x3]  ;;  %v289_v24 = vlaneseq }
  0x47   : > { %s268_s24 = sld [smem:[#allocation3]]  ;;  %v933_v1 = vld [vmem:[%s232_s30 + $0x1] ss:$4 sm:$0x3] }
  0x48   : > { %s502_s6 = sld [smem:[#allocation3 + $0x1]]  ;;  %v935_v2 = vld [vmem:[%s232_s30 + $0x2] ss:$4 sm:$0x3]  ;;  %vm956_vm0 = vcmp.lt.s32.totalorder %v289_v24, 256 }
  0x49   : > { %s503_s8 = sld [smem:[#allocation3 + $0x2]]  ;;  %v937_v4 = vld [vmem:[%s232_s30 + $0x3] ss:$4 sm:$0x3] }
  0x4a   : > { %s504_s9 = sld [smem:[#allocation3 + $0x3]] }
  0x4b   : > { %s931_s10 = sld [smem:[#allocation8]] }
  0x4c   : > { %s505_s11 = sld [smem:[#allocation3 + $0x80]]  ;;  %v286_v23 = vstv %s927_s5 }
  0x4d   : > { %v269_v3 = vstv %s268_s24  ;;  %s506_s25 = sld [smem:[#allocation3 + $0x81]] }
  0x4e   : > { %v270_v5 = vmul.f32 %v269_v3, %v929_v0  ;;  %v272_v6 = vstv %s502_s6  ;;  %s507_s26 = sld [smem:[#allocation3 + $0x82]] }
  0x4f   : > { %v273_v7 = vmul.f32 %v933_v1, %v272_v6  ;;  %v276_v8 = vstv %s503_s8  ;;  %s508_s12 = sld [smem:[#allocation3 + $0x83]] }
  0x50   : > { %v277_v9 = vmul.f32 %v935_v2, %v276_v8  ;;  %v280_v10 = vstv %s504_s9  ;;  %s942_s13 = sld [smem:[#allocation8 + $0x1]] }
  0x51   : > { %v274_v11 = vadd.f32 %v273_v7, %v270_v5  ;;  %v281_v12 = vmul.f32 %v937_v4, %v280_v10  ;;  %s511_s14 = sld [smem:[#allocation3 + $0x100]]  ;;  %v284_v17 = vstv %s931_s10 }
  0x52   : > { %v295_v13 = vstv %s505_s11  ;;  %s512_s15 = sld [smem:[#allocation3 + $0x101]]  ;;  %s965_s11 = scalar_lea.vmem [#allocation10], %s497_s28 }
  0x53   : > { %v278_v14 = vadd.f32 %v277_v9, %v274_v11  ;;  %v296_v15 = vmul.f32 %v295_v13, %v929_v0  ;;  %v298_v16 = vstv %s506_s25  ;;  %s513_s29 = sld [smem:[#allocation3 + $0x102]]  ;;  %s529_s28 = sshll.u32 %s747_s20, 7 }
  0x54   : > { %v299_v18 = vmul.f32 %v933_v1, %v298_v16  ;;  %v302_v19 = vstv %s507_s26  ;;  %s514_s30 = sld [smem:[#allocation3 + $0x103]]  ;;  %s377_s25 = sshll.u32 %s965_s11, 4  ;;  %s378_s25 = int_to_ptr.vmem [resolvable:$true] %s377_s25 }
  0x55   : > { %v282_v20 = vadd.f32 %v281_v12, %v278_v14  ;;  %v303_v21 = vmul.f32 %v935_v2, %v302_v19  ;;  %v306_v22 = vstv %s508_s12  ;;  %s949_s24 = sld [smem:[#allocation8 + $0x2]] }
  0x56   : > { %v300_v25 = vadd.f32 %v299_v18, %v296_v15  ;;  %v307_v26 = vmul.f32 %v937_v4, %v306_v22  ;;  %s517_s6 = sld [smem:[#allocation3 + $0x180]]  ;;  %v310_v33 = vstv %s942_s13  ;;  %s375_s13 = scalar_lea.hbm %s1032_s4, %s529_s28 }
  0x57   : > { %v285_v27 = vadd.f32 %v284_v17, %v282_v20  ;;  %v317_v28 = vstv %s511_s14  ;;  %s518_s8 = sld [smem:[#allocation3 + $0x181]]  ;;  %s361_s14 = scalar_lea.sflag [#allocation5], %s917_s23 }
  0x58   : > { %v304_v29 = vadd.f32 %v303_v21, %v300_v25  ;;  %v318_v30 = vmul.f32 %v317_v28, %v929_v0  ;;  %v320_v31 = vstv %s512_s15  ;;  %s519_s9 = sld [smem:[#allocation3 + $0x182]]  ;;  %s667_s15 = scalar_lea.vmem %s378_s25, 128 }
  0x59   : > { %v287_v32 = vmul.f32 %v286_v23, %v285_v27  ;;  %v321_v34 = vmul.f32 %v933_v1, %v320_v31  ;;  %v324_v35 = vstv %s513_s29  ;;  %s520_s5 = sld [smem:[#allocation3 + $0x183]]  ;;  %p668_p1 = scmp.ne.s32.totalorder %s378_s25, %s667_s15 }
  0x5a   : > { %v308_v37 = vadd.f32 %v307_v26, %v304_v29  ;;  %v325_v38 = vmul.f32 %v935_v2, %v324_v35  ;;  %v328_v39 = vstv %s514_s30  ;;  %s521_s10 = sld [smem:[#allocation8 + $0x3]]  ;;  %s760_s29 = smov [#allocation10]  }
  0x5b   : > { %v288_v40 = vadd.f32 %v287_v32, %v929_v0  ;;  %v322_v41 = vadd.f32 %v321_v34, %v318_v30  ;;  %v329_v42 = vmul.f32 %v937_v4, %v328_v39  ;;  %v332_v49 = vstv %s949_s24  ;;  %p669_p4 = pnand %p668_p1, %p885_p0  ;;  %s671_s20 = sshll.u32 %s760_s29, 4  ;;  %s672_s20 = int_to_ptr.vmem [resolvable:$false] %s671_s20 }
  0x5c   : > { %v311_v43 = vadd.f32 %v310_v33, %v308_v37  ;;  %v339_v44 = vstv %s517_s6  ;;  %s673_s30 = scalar_lea.vmem %s672_s20, 256  ;;  %p674_p5 = scmp.lt.s32.totalorder %s378_s25, %s672_s20 }
  0x5d   : > { %293 = vst.msk [vmem:[%s965_s11] ss:$4 sm:$0x3] %vm956_vm0, %v288_v40  ;;  %v326_v45 = vadd.f32 %v325_v38, %v322_v41  ;;  %v340_v46 = vmul.f32 %v339_v44, %v929_v0  ;;  %v342_v47 = vstv %s518_s8  ;;  %p670_p8 = pneg %p669_p4  ;;  %p675_p11 = scmp.lt.s32.totalorder %s673_s30, %s667_s15 }
  0x5e   : > { %v312_v48 = vmul.f32 %v311_v43, %v286_v23  ;;  %v343_v50 = vmul.f32 %v933_v1, %v342_v47  ;;  %v346_v51 = vstv %s519_s9 }
  0x5f   : > { %v330_v52 = vadd.f32 %v329_v42, %v326_v45  ;;  %v347_v53 = vmul.f32 %v935_v2, %v346_v51  ;;  %v350_v54 = vstv %s520_s5  ;;  %p676_p2 = por %p675_p11, %p674_p5 }
  0x60   : > { %v313_v55 = vadd.f32 %v933_v1, %v312_v48  ;;  %v344_v56 = vadd.f32 %v343_v50, %v340_v46  ;;  %v351_v57 = vmul.f32 %v937_v4, %v350_v54  ;;  %v354_v61 = vstv %s521_s10 }
  0x61   : > { %v333_v58 = vadd.f32 %v332_v49, %v330_v52  ;;  %p677_p12 = pnand %p676_p2, %p670_p8 }
  0x62   : > { %510 = vst.msk [vmem:[%s965_s11 + $0x1] ss:$4 sm:$0x3] %vm956_vm0, %v313_v55  ;;  %v348_v59 = vadd.f32 %v347_v53, %v344_v56 }
  0x63   : > { %v334_v60 = vmul.f32 %v333_v58, %v286_v23 }
  0x64   : > { %v352_v62 = vadd.f32 %v351_v57, %v348_v59 }
  0x65   : > { %v335_v63 = vadd.f32 %v935_v2, %v334_v60 }
  0x66   : > { %v355_v0 = vadd.f32 %v354_v61, %v352_v62 }
  0x67   : > { %516 = vst.msk [vmem:[%s965_s11 + $0x2] ss:$4 sm:$0x3] %vm956_vm0, %v335_v63 }
  0x68   : > { %v356_v1 = vmul.f32 %v355_v0, %v286_v23 }
  0x6a   : > { %v357_v3 = vadd.f32 %v937_v4, %v356_v1 }
  0x6c   : > { %522 = vst.msk [vmem:[%s965_s11 + $0x3] ss:$4 sm:$0x3] %vm956_vm0, %v357_v3 }
  0x6d   : > { %680 = shalt.err (!%p677_p12)
}
  0x6e   : > { %s681_s24 = scalar_lea.hbm %s375_s13, 128  ;;  %s685_s8 = scalar_lea.hbm %s1032_s4, 256 }
  0x6f   : > { %p682_p7 = scmp.ne.s32.totalorder %s375_s13, %s681_s24  ;;  %p686_p9 = scmp.lt.s32.totalorder %s375_s13, %s1032_s4 }
  0x70   : > { %p687_p13 = scmp.lt.s32.totalorder %s685_s8, %s681_s24 }
  0x71   : > { %p683_p10 = pnand %p682_p7, %p885_p0 }
  0x72   : > { %p688_p3 = por %p687_p13, %p686_p9 }
  0x73   : > { %p684_p6 = pneg %p683_p10 }
  0x75   : > { %p689_p1 = pnand %p688_p3, %p684_p6 }
  0x77   : > { %692 = shalt.err (!%p689_p1)
}
  0x78   : > { %540 = dma.vmem_to_hbm [thread:$0]  (%p885_p0), %s378_s25, 128, %s375_s13, %s361_s14  }
  0x79 PF: > { %s389_s10 = sand.u32 1, %s735_s17   ;;  %p1044_p4 = scmp.ne.s32.totalorder %s1036_s27, 0 }
  0x7a   : > { %p1045_p8 = scmp.ge.s32.totalorder %s755_s22, 2  ;;  %s390_s11 = scalar_lea.sflag [#allocation5], %s389_s10 }
  0x7c   : > { %p554_p5 = pnand %p1045_p8, %p1044_p4 }
  0x7e   : > { %p555_p11 = pneg %p554_p5 }
  0x80   : > { %730 = dma.done.wait (%p555_p11), %s390_s11, 128  }
  0x81   : > { %732 = vsyncadd (%p555_p11), %s390_s11, 4294967168  ;;  %s23_s22 = sadd.s32 1, %s755_s22   ;;  %s1046_s17 = smov %s739_s18 }
  0x82   : > { %p20_p2 = scmp.ge.s32.totalorder %s23_s22, 4   ;;  %s1047_s18 = smov %s743_s19 }
  0x83   : > { %s1048_s19 = smov %s891_s0  ;;  %s1049_s20 = smov %s751_s21 }
  0x84   : > { %s1050_s21 = smov %s1052_s7  ;;  %22 = sbr.rel (!%p20_p2) target bundleno = 10 (0xa), region = 97 }
  0x89   :  { %395 = vsyncpa [#allocation4], 1 }
  0x8a   :  { %397 = vsyncpa [#allocation4 + $0x1], 1 }
  0x8b   :  { %398 = vsyncpa [#allocation5], 1 }
  0x8c   :  { %400 = vsyncpa [#allocation5 + $0x1], 1 }
  0x8d   :  { %401 = vsyncpa [#allocation6], 1 }
  0x8e   :  { %403 = vsyncpa [#allocation6 + $0x1], 1 }
  0x8f   :  { %404 = vsyncpa [#allocation7], 1 }
  0x90   :  { %406 = vsyncpa [#allocation7 + $0x1], 1 }

</bundles_post_ra>
